<compile_context>
chip_gen: v7x
topology: tpu7x:2x2x1
jax: 0.10.0
libtpu: 0.0.40
codegen_flags: <defaults>
</compile_context>

<pallas_src>
import functools

import jax
import jax.numpy as jnp
from jax.experimental import pallas as pl
from jax.experimental.pallas import tpu as pltpu


def _se_sum_kernel(x_ref, sum_ref, *, hw, tile_hw, needs_mask):
    """Accumulate per-(batch, channel) pixel sums.

    x_ref:   (1, C, T) block of the (B, C, HW) input
    sum_ref: (1, 1, C) f32 output block, resident across the HW grid axis
    """
    i = pl.program_id(1)

    @pl.when(i == 0)
    def _():
        sum_ref[...] = jnp.zeros_like(sum_ref)

    x = x_ref[...].astype(jnp.float32)
    if needs_mask:
        # Ragged tail tile: mask lanes beyond HW instead of padding in HBM.
        col = i * tile_hw + jax.lax.broadcasted_iota(jnp.int32, x.shape, 2)
        x = jnp.where(col < hw, x, 0.0)
    sum_ref[...] += jnp.sum(x, axis=-1)[:, None, :]


def _se_scale_kernel(sum_ref, w1_ref, w2_ref, x_ref, o_ref, *, inv_hw):
    """y = x * sigmoid(w2 * relu(w1 . mean_c(x)))  per channel.

    sum_ref: (1, 1, C) per-batch channel sums
    w1_ref:  (1, C)  weights of Conv2d(C, 1, 1, bias=False)
    w2_ref:  (1, C)  weights of Conv2d(1, C, 1, bias=False)
    x_ref:   (1, C, T) input tile;  o_ref: same shape output tile
    """
    mean = sum_ref[0] * inv_hw                                   # (1, C)
    z = jnp.sum(mean * w1_ref[...], axis=-1, keepdims=True)      # 1x1 conv C->1
    z = jnp.maximum(z, 0.0)                                      # ReLU
    a = z * w2_ref[...]                                          # 1x1 conv 1->C
    scale = 1.0 / (1.0 + jnp.exp(-a))                            # Sigmoid (EUP)
    y = x_ref[...].astype(jnp.float32) * scale[:, :, None]
    o_ref[...] = y.astype(o_ref.dtype)


def se_block(x, w1, w2, *, tile_hw=8192):
    """SEBlock.forward:  x * sigmoid(conv1x1(relu(conv1x1(avgpool(x)))))."""
    B, C, H, W = x.shape
    hw = H * W
    x3 = x.reshape(B, C, hw)                      # free reshape, no transpose
    w1r = jnp.asarray(w1, jnp.float32).reshape(1, C)
    w2r = jnp.asarray(w2, jnp.float32).reshape(1, C)

    # Tile the pixel axis.  For C=31, a tile of 8192 lanes is ~1 MiB per
    # buffer (well inside v7x's 64 MiB VMEM); small images use the full row.
    t = hw if hw <= tile_hw else tile_hw          # tile_hw is a multiple of 128
    num_hw = pl.cdiv(hw, t)
    needs_mask = (hw % t) != 0
    itemsize = jnp.dtype(x.dtype).itemsize

    # ---- Pass 1: per-(b, c) sums (reduction over the HW grid axis) ----------
    sums = pl.pallas_call(
        functools.partial(_se_sum_kernel, hw=hw, tile_hw=t,
                          needs_mask=needs_mask),
        out_shape=jax.ShapeDtypeStruct((B, 1, C), jnp.float32),
        grid_spec=pltpu.PrefetchScalarGridSpec(
            num_scalar_prefetch=0,
            grid=(B, num_hw),
            in_specs=[pl.BlockSpec((1, C, t), lambda b, i: (b, 0, i))],
            out_specs=pl.BlockSpec((1, 1, C), lambda b, i: (b, 0, 0)),
        ),
        compiler_params=pltpu.CompilerParams(
            dimension_semantics=("parallel", "arbitrary")),
        cost_estimate=pl.CostEstimate(
            flops=int(B * C * hw),
            transcendentals=0,
            bytes_accessed=int(B * C * hw * itemsize + B * C * 4)),
    )(x3)

    # ---- Pass 2: gate + elementwise scale (fully parallel grid) -------------
    y3 = pl.pallas_call(
        functools.partial(_se_scale_kernel, inv_hw=1.0 / hw),
        out_shape=jax.ShapeDtypeStruct((B, C, hw), x.dtype),
        grid_spec=pltpu.PrefetchScalarGridSpec(
            num_scalar_prefetch=0,
            grid=(B, num_hw),
            in_specs=[
                pl.BlockSpec((1, 1, C), lambda b, i: (b, 0, 0)),
                pl.BlockSpec((1, C), lambda b, i: (0, 0)),
                pl.BlockSpec((1, C), lambda b, i: (0, 0)),
                pl.BlockSpec((1, C, t), lambda b, i: (b, 0, i)),
            ],
            out_specs=pl.BlockSpec((1, C, t), lambda b, i: (b, 0, i)),
        ),
        compiler_params=pltpu.CompilerParams(
            dimension_semantics=("parallel", "parallel")),
        cost_estimate=pl.CostEstimate(
            flops=int(2 * B * C * hw),
            transcendentals=int(B * C),
            bytes_accessed=int(2 * B * C * hw * itemsize)),
    )(sums, w1r, w2r, x3)

    return y3.reshape(B, C, H, W)


def _reference(x, w1, w2):
    s = jnp.mean(x, axis=(2, 3))                         # AdaptiveAvgPool2d(1,1)
    z = jnp.maximum(jnp.einsum("bc,c->b", s, w1), 0.0)   # Conv2d(C,1,1) + ReLU
    a = jax.nn.sigmoid(z[:, None] * w2[None, :])         # Conv2d(1,C,1) + Sigmoid
    return x * a[:, :, None, None]


if __name__ == "__main__":
    key = jax.random.PRNGKey(0)
    k1, k2, k3 = jax.random.split(key, 3)
    B, C, H, W = 2, 31, 16, 16                 # module hard-codes 31 channels
    x = jax.random.normal(k1, (B, C, H, W), dtype=jnp.float32)
    w1 = jax.random.normal(k2, (C,), dtype=jnp.float32) * 0.1
    w2 = jax.random.normal(k3, (C,), dtype=jnp.float32) * 0.1

    y = jax.block_until_ready(se_block(x, w1, w2))
    ref = jax.block_until_ready(_reference(x, w1, w2))
    assert y.shape == ref.shape
    assert jnp.allclose(y, ref, atol=1e-5, rtol=1e-5), (
        float(jnp.max(jnp.abs(y - ref))))
    print("KERNEL_OK")
</pallas_src>

<mosaic_0001>
module attributes {stable_mosaic.version = 11 : i64} {
  func.func @_se_sum_kernel(%arg0: i32, %arg1: i32, %arg2: memref<1x31x256xf32, #tpu.memory_space<vmem>>, %arg3: memref<1x1x31xf32, #tpu.memory_space<vmem>>) attributes {dimension_semantics = [#tpu.dimension_semantics<parallel>, #tpu.dimension_semantics<arbitrary>], iteration_bounds = array<i64: 2, 1>, scalar_prefetch = 0 : i64, scratch_operands = 0 : i64, tpu.core_type = #tpu.core_type<tc>, window_params = [{transform_indices = @transform_0, window_bounds = array<i64: 1, 31, 256>}, {transform_indices = @transform_1, window_bounds = array<i64: 1, 1, 31>}]} {
    %c0_i32 = arith.constant 0 : i32
    %0 = arith.cmpi eq, %arg1, %c0_i32 : i32
    %1 = arith.extui %0 : i1 to i32
    %c0_i32_0 = arith.constant 0 : i32
    %2 = arith.cmpi ne, %1, %c0_i32_0 : i32
    scf.if %2 {
      %cst_9 = arith.constant 0.000000e+00 : f32
      %9 = vector.broadcast %cst_9 : f32 to vector<1x1x31xf32>
      %c0_10 = arith.constant 0 : index
      %c0_11 = arith.constant 0 : index
      %c0_12 = arith.constant 0 : index
      %10 = vector.load %arg3[%c0_10, %c0_11, %c0_12] : memref<1x1x31xf32, #tpu.memory_space<vmem>>, vector<1x1x31xf32>
      tpu.vector_store %arg3[%c0_10, %c0_11, %c0_12], %9 {strides = array<i32>} : memref<1x1x31xf32, #tpu.memory_space<vmem>>, vector<1x1x31xf32>,
    } else {
    }
    %c0 = arith.constant 0 : index
    %c0_1 = arith.constant 0 : index
    %c0_2 = arith.constant 0 : index
    %3 = vector.load %arg2[%c0, %c0_1, %c0_2] : memref<1x31x256xf32, #tpu.memory_space<vmem>>, vector<1x31x256xf32>
    %c0_3 = arith.constant 0 : index
    %c0_4 = arith.constant 0 : index
    %c0_5 = arith.constant 0 : index
    %4 = vector.load %arg3[%c0_3, %c0_4, %c0_5] : memref<1x1x31xf32, #tpu.memory_space<vmem>>, vector<1x1x31xf32>
    %cst = arith.constant dense<0.000000e+00> : vector<1x31xf32>
    %5 = vector.multi_reduction <add>, %3, %cst [2] : vector<1x31x256xf32> to vector<1x31xf32>
    %6 = vector.shape_cast %5 : vector<1x31xf32> to vector<1x1x31xf32>
    %7 = arith.addf %4, %6 : vector<1x1x31xf32>
    %c0_6 = arith.constant 0 : index
    %c0_7 = arith.constant 0 : index
    %c0_8 = arith.constant 0 : index
    %8 = vector.load %arg3[%c0_6, %c0_7, %c0_8] : memref<1x1x31xf32, #tpu.memory_space<vmem>>, vector<1x1x31xf32>
    tpu.vector_store %arg3[%c0_6, %c0_7, %c0_8], %7 {strides = array<i32>} : memref<1x1x31xf32, #tpu.memory_space<vmem>>, vector<1x1x31xf32>,
    return
  }
  func.func @transform_0(%arg0: i32, %arg1: i32) -> (i32, i32, i32) {
    %c0_i32 = arith.constant 0 : i32
    %c0_i32_0 = arith.constant 0 : i32
    return %arg0, %c0_i32, %arg1 : i32, i32, i32
  }
  func.func @transform_1(%arg0: i32, %arg1: i32) -> (i32, i32, i32) {
    %c0_i32 = arith.constant 0 : i32
    %c0_i32_0 = arith.constant 0 : i32
    %c0_i32_1 = arith.constant 0 : i32
    return %arg0, %c0_i32, %c0_i32_0 : i32, i32, i32
  }
}

</mosaic_0001>

<bundles_post_ra>
// kernel: tpu_custom_call.1
= control target key start
LH: loop header
LB: loop body
LE: loop exit
PB: predicated region body
PF: predicated region fallthrough
CT: control target
= control target key end

     0   :  { %6 = vsyncpa [#allocation3], 0  ;;  %s1010_s0 = inlined_call_operand.vmem [shape: f32[2,31,256], index: 0, kind: input, shape index: {}]   ;;  %s1011_s1 = inlined_call_operand.hbm [shape: f32[2,1,31], index: 1, kind: output, shape index: {}]  }
   0x1   :  { %8 = vsyncpa [#allocation3 + $0x1], 0  ;;  %s799_s6 = smov 0   ;;  %s801_s7 = smov 0  }
   0x2   :  { %s803_s8 = smov 0   ;;  %s805_s9 = smov 0  }
   0x3   :  { %s807_s10 = smov 0   ;;  %s809_s11 = smov 0  }
   0x4 LB: > { %s634_s12 = sadd.s32 4294967295, %s783_s11   ;;  %s635_s13 = sadd.s32 4294967294, %s783_s11   ;;  %s783_s11 = sphi %s809_s11, %s14_s11   ;;  %s779_s10 = sphi %s807_s10, %s1018_s10   ;;  %s775_s9 = sphi %s805_s9, %s1017_s9   ;;  %s771_s8 = sphi %s803_s8, %s1016_s8   ;;  %s767_s7 = sphi %s801_s7, %s1015_s7   ;;  %s763_s6 = sphi %s799_s6, %s1014_s6  }
   0x5   : > { %s26_s14 = sadd.s32 1, %s779_s10  ;;  %s61_s15 = sadd.s32 1, %s771_s8 }
   0x6   : > { %p28_p0 = scmp.ge.s32.totalorder %s26_s14, 2  ;;  %p71_p1 = scmp.ne.s32.totalorder %s771_s8, %s767_s7 }
   0x7   : > { %p72_p2 = scmp.eq.s32.totalorder %s634_s12, 1  ;;  %p77_p3 = scmp.ne.s32.totalorder %s767_s7, %s763_s6 }
   0x8   : > { %s1020_s14 = smov (%p28_p0, %s26_s14), 0  ;;  %p78_p5 = scmp.eq.s32.totalorder %s635_s13, 1 }
   0x9   : > { %p839_p4 = por %p72_p2, %p71_p1  ;;  %s58_s17 = ssub.s32 %s779_s10, %s1020_s14 }
   0xa   : > { %p638_p6 = scmp.ge.s32.totalorder %s783_s11, 1  ;;  %p59_p7 = scmp.eq.s32.totalorder %s58_s17, 0 }
   0xb   : > { %p846_p8 = por %p78_p5, %p77_p3  ;;  %p109_p9 = scmp.lt.s32.totalorder %s783_s11, 3 }
   0xc   : > { %s852_s19 = scalar_select %p59_p7, %s771_s8, %s61_s15  }
   0xd   : > { %p110_p10 = pnand %p638_p6, %p109_p9 }
   0xe   : > { %p133_p11 = scmp.lt.s32.totalorder (!%p110_p10), %s775_s9, 1  ;;  %vm166_vm0 = vcmask (!%p110_p10), 1046528   ;;  %v785_v14 = vmov (!%p110_p10), 0   ;;  %v176_v15 = vlaneseq (!%p110_p10)  ;;  %v786_v16 = vmov (!%p110_p10), 1966171168   ;;  %s130_s25 = sand.u32 (!%p110_p10), 1, %s767_s7  }
   0xf   : > { %113 = sbr.rel (%p110_p10) target bundleno = 349 (0x15d), region = 24  ;;  %703 = vset.pattern.permute.xlu0 (!%p110_p10), %v785_v14  ;;  %704 = vset.pattern.permute.xlu1 (!%p110_p10), %v785_v14  ;;  %v305_v17 = vunpack.c.l.s4 (!%p110_p10), %v786_v16  ;;  %vm146_vm1 = vcmask (!%p110_p10), 245760   ;;  %s942_s26 = scalar_lea.vmem (!%p110_p10), [#allocation2], %s130_s25  ;;  %vm518_vm2 = vcmask (!%p110_p10), 130112   ;;  %vm525_vm3 = vcmask (!%p110_p10), 195712  }
  0x10   : > { %v860_v18 = vshrl.u32 (!%p110_p10), %v176_v15, 7  ;;  %vm532_vm4 = vcmask (!%p110_p10), 261312   ;;  %s641_s27 = sshll.u32 (!%p110_p10), %s775_s9, 4  ;;  %s565_s28 = sshll.u32 (!%p110_p10), %s942_s26, 4  ;;  %s961_s28 = int_to_ptr.vmem [resolvable:$true] %s565_s28 }
  0x11   : > { %v306_v19 = vunpack.c.0.s8 (!%p110_p10), %v305_v17  ;;  %s959_s2 = scalar_lea.hbm (!%p110_p10), %s1011_s1, %s641_s27  ;;  %s553_s3 = scalar_lea.sflag (!%p110_p10), [#allocation3], %s130_s25 }
  0x12   : > { %v863_v20 = vsub.s32 (!%p110_p10), 0, %v860_v18  ;;  %v866_v21 = vsub.s32 (!%p110_p10), 1, %v860_v18  ;;  %v869_v22 = vsub.s32 (!%p110_p10), 2, %v860_v18  ;;  %v872_v23 = vsub.s32 (!%p110_p10), 3, %v860_v18  ;;  %s705_s4 = scalar_lea.vmem (!%p110_p10), %s961_s28, 16  ;;  %s788_s5 = smov (!%p110_p10), [#allocation2]  }
  0x13   : > { %v875_v24 = vsub.s32 (!%p110_p10), 4, %v860_v18  ;;  %v878_v25 = vsub.s32 (!%p110_p10), 5, %v860_v18  ;;  %v881_v26 = vsub.s32 (!%p110_p10), 6, %v860_v18  ;;  %v206_v27 = vsub.s32 (!%p110_p10), 7, %v860_v18  ;;  %p706_p12 = scmp.ne.s32.totalorder (!%p110_p10), %s961_s28, %s705_s4 }
  0x14   : > { %v885_v29 = vsub.s32 (!%p110_p10), %v306_v19, %v860_v18 }
  0x15   : > { %p707_p13 = pnand (!%p110_p10), %p706_p12, %p839_p4 }
  0x16   : > { %s134_s20 = scalar_select %p133_p11, %s775_s9, 1 }
  0x17   : > { %p708_p0 = pneg %p707_p13  ;;  %s709_s9 = sshll.u32 %s788_s5, 4  ;;  %s710_s9 = int_to_ptr.vmem [resolvable:$false] %s709_s9 }
  0x18   : > { %s644_s21 = sshll.u32 %s134_s20, 6  ;;  %s711_s12 = scalar_lea.vmem %s710_s9, 32 }
  0x19   : > { %s140_s24 = scalar_lea.vmem %s1010_s0, %s644_s21  ;;  %p712_p1 = scmp.lt.s32.totalorder %s961_s28, %s710_s9 }
  0x1a   : > { %v148_v0 = vld [vmem:[%s140_s24] sm:$0xff]  ;;  %v149_v1 = vld [vmem:[%s140_s24 + $0x8] sm:$0xff]  ;;  %v150_v2 = vld [vmem:[%s140_s24 + $0x10] sm:$0xff]  ;;  %p713_p2 = scmp.lt.s32.totalorder %s711_s12, %s705_s4 }
  0x1b   : > { %v157_v3 = vadd.f32 %v149_v1, %v148_v0  ;;  %v151_v4 = vld [vmem:[%s140_s24 + $0x18] sm:$0xff]  ;;  %v152_v5 = vld [vmem:[%s140_s24 + $0x20] sm:$0xff]  ;;  %v153_v6 = vld [vmem:[%s140_s24 + $0x28] sm:$0xff] }
  0x1c   : > { %v163_v7 = vadd.f32 %v153_v6, %v152_v5  ;;  %v154_v8 = vld [vmem:[%s140_s24 + $0x30] sm:$0x7f]  ;;  %v155_v9 = vld [vmem:[%s140_s24 + $0x38] sm:$0x7f]  ;;  %v160_v10 = vadd.f32 %v151_v4, %v150_v2  ;;  %p714_p3 = por %p713_p2, %p712_p1 }
  0x1d   : > { %158 = vadd.xlane.f32.xlu0 %v157_v3  ;;  %v167_v11 = vsel %vm166_vm0, %v154_v8, 0.0  ;;  %v168_v12 = vsel %vm166_vm0, %v155_v9, 0.0 }
  0x1e   : > { %164 = vadd.xlane.f32.xlu1 %v163_v7  ;;  %v169_v13 = vadd.f32 %v168_v12, %v167_v11  ;;  %p715_p5 = pnand %p714_p3, %p708_p0 }
  0x21   : > { %161 = vadd.xlane.f32.xlu0 %v160_v10 }
  0x22   : > { %170 = vadd.xlane.f32.xlu1 %v169_v13 }
  0xaa   : > { %v159_v28 = vpop.xlane.xlu0 %158 }
  0xab   : > { %v179_v30 = vrot.slane %v159_v28, %v863_v20  ;;  %v183_v31 = vrot.slane %v159_v28, %v866_v21  ;;  %v187_v32 = vrot.slane %v159_v28, %v869_v22  ;;  %v191_v33 = vrot.slane %v159_v28, %v872_v23  ;;  %v165_v34 = vpop.xlane.xlu1 %164 }
  0xac   : > { %v195_v35 = vrot.slane %v159_v28, %v875_v24  ;;  %v199_v36 = vrot.slane %v159_v28, %v878_v25  ;;  %v203_v37 = vrot.slane %v159_v28, %v881_v26  ;;  %v207_v38 = vrot.slane %v159_v28, %v206_v27 }
  0xad   : > { %v300_v39 = vcombine.low %v179_v30, %v183_v31  ;;  %v301_v40 = vcombine.low %v187_v32, %v191_v33  ;;  %v243_v41 = vrot.slane %v165_v34, %v863_v20  ;;  %v247_v42 = vrot.slane %v165_v34, %v866_v21 }
  0xae   : > { %v162_v43 = vpop.xlane.xlu0 %161  ;;  %v302_v44 = vcombine.low %v195_v35, %v199_v36  ;;  %v303_v45 = vcombine.low %v203_v37, %v207_v38  ;;  %v251_v46 = vrot.slane %v165_v34, %v869_v22  ;;  %v255_v47 = vrot.slane %v165_v34, %v872_v23 }
  0xaf   : > { %v310_v48 = vrot.slane %v300_v39, %v885_v29  ;;  %v317_v49 = vrot.slane %v301_v40, %v885_v29  ;;  %v211_v50 = vrot.slane %v162_v43, %v863_v20  ;;  %v215_v51 = vrot.slane %v162_v43, %v866_v21  ;;  %v171_v4 = vpop.xlane.xlu1 %170 }
  0xb0   : > { %v324_v52 = vrot.slane %v302_v44, %v885_v29  ;;  %v331_v53 = vrot.slane %v303_v45, %v885_v29  ;;  %v219_v54 = vrot.slane %v162_v43, %v869_v22  ;;  %v223_v55 = vrot.slane %v162_v43, %v872_v23 }
  0xb1   : > { %v332_v56 = vcombine.low %v310_v48, %v317_v49  ;;  %v227_v57 = vrot.slane %v162_v43, %v875_v24  ;;  %v231_v58 = vrot.slane %v162_v43, %v878_v25  ;;  %v235_v59 = vrot.slane %v162_v43, %v881_v26 }
  0xb2   : > { %v333_v60 = vcombine.low %v324_v52, %v331_v53  ;;  %v239_v61 = vrot.slane %v162_v43, %v206_v27  ;;  %v349_v62 = vcombine.low %v211_v50, %v215_v51  ;;  %v350_v63 = vcombine.low %v219_v54, %v223_v55 }
  0xb3   : > { %v340_v0 = vrot.slane %v332_v56, %v885_v29  ;;  %v351_v1 = vcombine.low %v227_v57, %v231_v58  ;;  %v259_v2 = vrot.slane %v165_v34, %v875_v24  ;;  %v263_v3 = vrot.slane %v165_v34, %v878_v25 }
  0xb4   : > { %v347_v5 = vrot.slane %v333_v60, %v885_v29  ;;  %v352_v6 = vcombine.low %v235_v59, %v239_v61  ;;  %v359_v7 = vrot.slane %v349_v62, %v885_v29  ;;  %v366_v8 = vrot.slane %v350_v63, %v885_v29 }
  0xb5   : > { %v373_v9 = vrot.slane %v351_v1, %v885_v29  ;;  %v267_v10 = vrot.slane %v165_v34, %v881_v26  ;;  %v271_v11 = vrot.slane %v165_v34, %v206_v27  ;;  %v398_v12 = vcombine.low %v243_v41, %v247_v42 }
  0xb6   : > { %v348_v13 = vcombine.low %v340_v0, %v347_v5  ;;  %v380_v14 = vrot.slane %v352_v6, %v885_v29  ;;  %v381_v16 = vcombine.low %v359_v7, %v366_v8  ;;  %v399_v17 = vcombine.low %v251_v46, %v255_v47 }
  0xb7   : > { %v400_v19 = vcombine.low %v259_v2, %v263_v3  ;;  %v401_v28 = vcombine.low %v267_v10, %v271_v11  ;;  %v408_v30 = vrot.slane %v398_v12, %v885_v29  ;;  %v275_v31 = vrot.slane %v171_v4, %v863_v20 }
  0xb8   : > { %496 = vperm.xlu0 %703, %v348_v13   ;;  %v382_v32 = vcombine.low %v373_v9, %v380_v14  ;;  %v389_v33 = vrot.slane %v381_v16, %v885_v29  ;;  %v415_v35 = vrot.slane %v399_v17, %v885_v29  ;;  %v279_v27 = vrot.slane %v171_v4, %v866_v21 }
  0xb9   : > { %v422_v34 = vrot.slane %v400_v19, %v885_v29  ;;  %v429_v36 = vrot.slane %v401_v28, %v885_v29  ;;  %v283_v37 = vrot.slane %v171_v4, %v869_v22  ;;  %v287_v38 = vrot.slane %v171_v4, %v872_v23 }
  0xba   : > { %v396_v39 = vrot.slane %v382_v32, %v885_v29  ;;  %v430_v40 = vcombine.low %v408_v30, %v415_v35  ;;  %v291_v20 = vrot.slane %v171_v4, %v875_v24  ;;  %v295_v41 = vrot.slane %v171_v4, %v878_v25 }
  0xbb   : > { %v431_v42 = vcombine.low %v422_v34, %v429_v36  ;;  %v299_v43 = vrot.slane %v171_v4, %v881_v26  ;;  %v447_v44 = vcombine.low %v275_v31, %v279_v27  ;;  %v448_v21 = vcombine.low %v283_v37, %v287_v38 }
  0xbc   : > { %v397_v45 = vcombine.low %v389_v33, %v396_v39  ;;  %v438_v46 = vrot.slane %v430_v40, %v885_v29  ;;  %v449_v47 = vcombine.low %v291_v20, %v295_v41  ;;  %v787_v54 = vmov 0.0  }
  0xbd   : > { %v445_v22 = vrot.slane %v431_v42, %v885_v29  ;;  %v456_v23 = vrot.slane %v447_v44, %v885_v29  ;;  %v463_v48 = vrot.slane %v448_v21, %v885_v29  ;;  %v477_v24 = vrot.slane %v299_v43, %v885_v29  ;;  %147 = vst.msk [vmem:[%s942_s26] sm:$0x1] %vm146_vm1, %v787_v54 }
  0xbe   : > { %499 = vperm.xlu1 %704, %v397_v45   ;;  %v470_v25 = vrot.slane %v449_v47, %v885_v29  ;;  %v508_v55 = vand.u32 127, %v176_v15 }
  0xbf   : > { %v446_v26 = vcombine.low %v438_v46, %v445_v22  ;;  %v478_v49 = vcombine.low %v456_v23, %v463_v48 }
  0xc0   : > { %v479_v50 = vcombine.low %v470_v25, %v477_v24  ;;  %v513_v56 = vadd.s32 4294967288, %v508_v55  ;;  %v520_v57 = vadd.s32 4294967280, %v508_v55  ;;  %v527_v60 = vadd.s32 4294967272, %v508_v55 }
  0xc1   : > { %v486_v51 = vrot.slane %v478_v49, %v885_v29  ;;  %v511_v62 = vsub.s32 %v508_v55, %v860_v18 }
  0xc2   : > { %502 = vperm.xlu1 %704, %v446_v26   ;;  %v493_v52 = vrot.slane %v479_v50, %v885_v29  ;;  %v516_v59 = vsub.s32 %v513_v56, %v860_v18  ;;  %v523_v61 = vsub.s32 %v520_v57, %v860_v18  ;;  %v530_v2 = vsub.s32 %v527_v60, %v860_v18 }
  0xc4   : > { %v494_v53 = vcombine.low %v486_v51, %v493_v52  ;;  %v156_v10 = vld [vmem:[%s942_s26] sm:$0x1] }
  0xc6   : > { %505 = vperm.xlu1 %704, %v494_v53  }
 0x137   : > { %v497_v63 = vpop.permute.xlu0 %496 }
 0x138   : > { %v512_v3 = vrot.slane %v497_v63, %v511_v62 }
 0x13d   : > { %v500_v58 = vpop.permute.xlu1 %499 }
 0x13e   : > { %v517_v1 = vrot.slane %v500_v58, %v516_v59 }
 0x140   : > { %v519_v5 = vsel %vm518_vm2, %v517_v1, %v512_v3 }
 0x141   : > { %v503_v0 = vpop.permute.xlu1 %502 }
 0x142   : > { %v524_v15 = vrot.slane %v503_v0, %v523_v61 }
 0x144   : > { %v526_v7 = vsel %vm525_vm3, %v524_v15, %v519_v5 }
 0x145   : > { %v506_v4 = vpop.permute.xlu1 %505 }
 0x146   : > { %v531_v6 = vrot.slane %v506_v4, %v530_v2 }
 0x148   : > { %v533_v8 = vsel %vm532_vm4, %v531_v6, %v526_v7 }
 0x149   : > { %v540_v9 = vrot.slane %v533_v8, %v885_v29 }
 0x14b   : > { %v547_v18 = vrot.slane %v540_v9, %v885_v29 }
 0x14d   : > { %v549_v11 = vadd.f32 %v547_v18, %v156_v10 }
 0x14f   : > { %551 = vst.msk [vmem:[%s942_s26] sm:$0x1] %vm146_vm1, %v549_v11 }
 0x150   : > { %718 = shalt.err (!%p715_p5)
}
 0x151   : > { %s719_s13 = scalar_lea.hbm %s959_s2, 16  ;;  %s723_s20 = scalar_lea.hbm %s1011_s1, 32 }
 0x152   : > { %p720_p6 = scmp.ne.s32.totalorder %s959_s2, %s719_s13  ;;  %p724_p10 = scmp.lt.u32.totalorder %s959_s2, %s1011_s1 }
 0x153   : > { %p725_p11 = scmp.lt.u32.totalorder %s723_s20, %s719_s13  ;;  %p727_p13 = scmp.lt.u32.totalorder %s719_s13, %s959_s2 }
 0x154   : > { %p721_p7 = pnand %p720_p6, %p839_p4 }
 0x155   : > { %p726_p12 = por %p725_p11, %p724_p10 }
 0x156   : > { %p722_p9 = pneg %p721_p7 }
 0x157   : > { %p728_p0 = por %p727_p13, %p726_p12 }
 0x159   : > { %p729_p1 = pnand %p728_p0, %p722_p9 }
 0x15b   : > { %732 = shalt.err (!%p729_p1)
}
 0x15c   : > { %645 = dma.vmem_to_hbm [thread:$0]  (%p839_p4), %s961_s28, 16, %s959_s2, %s553_s3  }
 0x15d PF: > { %p651_p2 = scmp.ge.s32.totalorder %s783_s11, 2  ;;  %s577_s23 = sand.u32 1, %s763_s6  }
 0x15e   : > { %s578_s24 = scalar_lea.sflag [#allocation3], %s577_s23 }
 0x15f   : > { %p648_p3 = pnand %p651_p2, %p846_p8 }
 0x161   : > { %758 = dma.done.wait (!%p648_p3), %s578_s24, 16  }
 0x162   : > { %760 = vsyncadd (!%p648_p3), %s578_s24, 4294967280  ;;  %s14_s11 = sadd.s32 1, %s783_s11   ;;  %s1014_s6 = smov %s767_s7 }
 0x163   : > { %p11_p5 = scmp.ge.s32.totalorder %s14_s11, 4   ;;  %s1015_s7 = smov %s771_s8 }
 0x164   : > { %s1016_s8 = smov %s852_s19  ;;  %s1017_s9 = smov %s779_s10 }
 0x165   : > { %s1018_s10 = smov %s1020_s14  ;;  %13 = sbr.rel (!%p11_p5) target bundleno = 4 (0x4), region = 63 }
 0x16c   :  { %582 = vsyncpa [#allocation3], 1 }
 0x16d   :  { %584 = vsyncpa [#allocation3 + $0x1], 1 }

</bundles_post_ra>
